<compile_context>
chip_gen: v6e
topology: v6e:2x2x1
jax: 0.10.0
libtpu: 0.0.40
codegen_flags: <defaults>
</compile_context>

<pallas_src>
import functools

import jax
import jax.numpy as jnp
import numpy as np
from jax import lax
from jax.experimental import pallas as pl
from jax.experimental.pallas import tpu as pltpu


# ------------------------------ Pallas kernel ------------------------------ #

def _bottleneck_kernel(x_ref, w1_ref, w2_ref, w3_ref, b1_ref, b2_ref, b3_ref,
                       o_ref, *, width, mflat):
    """Fused Bottleneck body for one image in channels-first GEMM layout.

    x_ref  : (1, Cin, M)    input image, M = H*W on the lane axis
    w1_ref : (Pp, Cin)      conv1 weight^T, BN1 scale folded, P padded to Pp
    w2_ref : (Pp, 9*Pp)     conv2 weights flattened over the 9 taps, BN2 folded
    w3_ref : (Cout, Pp)     conv3 weight^T with BN3 scale folded
    b*_ref : (C, 1)         folded BN biases
    o_ref  : (1, Cout, M)   output image
    """
    x = x_ref[0].astype(jnp.float32)                              # (Cin, M)

    # conv1 (1x1) + bn1 + relu
    h1 = jnp.dot(w1_ref[...], x, preferred_element_type=jnp.float32)  # (Pp, M)
    h1 = jnp.maximum(h1 + b1_ref[...], 0.0)

    # conv2 (3x3, stride 1, pad 1): in-kernel im2col via lane rolls + masks.
    # The 9 taps are stacked along sublanes (each chunk is 8-aligned) and fed
    # to a single MXU GEMM with contraction depth 9*Pp.
    pos = lax.broadcasted_iota(jnp.int32, (1, mflat), 1)           # flat index
    col = pos % width                                              # column index
    taps = []
    for dh in range(3):
        for dw in range(3):
            shift = (dh - 1) * width + (dw - 1)
            if shift == 0:
                taps.append(h1)
            else:
                # rolled[:, m] == h1[:, (m + shift) mod M]
                rolled = pltpu.roll(h1, shift=(-shift) % mflat, axis=1)
                valid = (pos + shift >= 0) & (pos + shift < mflat)
                if dw != 1:
                    dc = dw - 1
                    valid = valid & (col + dc >= 0) & (col + dc < width)
                taps.append(rolled * valid.astype(jnp.float32))    # zero-pad halo
    im2col = jnp.concatenate(taps, axis=0)                         # (9*Pp, M)
    h2 = jnp.dot(w2_ref[...], im2col, preferred_element_type=jnp.float32)
    h2 = jnp.maximum(h2 + b2_ref[...], 0.0)                        # (Pp, M)

    # conv3 (1x1) + bn3 + residual + relu   (downsample is None => Cin == Cout)
    h3 = jnp.dot(w3_ref[...], h2, preferred_element_type=jnp.float32)  # (Cout, M)
    h3 = h3 + b3_ref[...] + x
    o_ref[0] = jnp.maximum(h3, 0.0).astype(o_ref.dtype)


# ------------------------------- wrapper ------------------------------------ #

def bottleneck_pallas(x_nchw, folded):
    """Bottleneck forward (stride=1, dilation=1, downsample=None). NCHW in/out."""
    n, cin, h, w = x_nchw.shape
    m = h * w
    p_pad = folded["w1t"].shape[0]
    cout = folded["w3t"].shape[0]
    assert cin == cout, "downsample is None => inplanes must equal 4*planes"

    x3 = x_nchw.reshape(n, cin, m)            # channels on sublanes, H*W on lanes
    kernel = functools.partial(_bottleneck_kernel, width=w, mflat=m)
    full2d = lambda i: (0, 0)

    out = pl.pallas_call(
        kernel,
        out_shape=jax.ShapeDtypeStruct((n, cout, m), x_nchw.dtype),
        grid_spec=pltpu.PrefetchScalarGridSpec(
            num_scalar_prefetch=0,
            grid=(n,),                                            # >= 2 parallel steps
            in_specs=[
                pl.BlockSpec((1, cin, m), lambda i: (i, 0, 0)),   # x, one image/step
                pl.BlockSpec((p_pad, cin), full2d),               # w1t (resident)
                pl.BlockSpec((p_pad, 9 * p_pad), full2d),         # w2 flat (resident)
                pl.BlockSpec((cout, p_pad), full2d),              # w3t (resident)
                pl.BlockSpec((p_pad, 1), full2d),                 # b1
                pl.BlockSpec((p_pad, 1), full2d),                 # b2
                pl.BlockSpec((cout, 1), full2d),                  # b3
            ],
            out_specs=pl.BlockSpec((1, cout, m), lambda i: (i, 0, 0)),
        ),
        compiler_params=pltpu.CompilerParams(
            dimension_semantics=("parallel",)),
    )(x3, folded["w1t"], folded["w2flat"], folded["w3t"],
      folded["b1"], folded["b2"], folded["b3"])
    return out.reshape(n, cout, h, w)


# --------------------------- reference (pure JAX) --------------------------- #

def bottleneck_ref(x_nchw, raw):
    dn = ("NCHW", "HWIO", "NCHW")

    def bn(y, s, b):
        return y * s.reshape(1, -1, 1, 1) + b.reshape(1, -1, 1, 1)

    out = lax.conv_general_dilated(x_nchw, raw["w1_hwio"], (1, 1),
                                   [(0, 0), (0, 0)], dimension_numbers=dn)
    out = jnp.maximum(bn(out, raw["s1"], raw["b1"]), 0.0)
    out = lax.conv_general_dilated(out, raw["w2_hwio"], (1, 1),
                                   [(1, 1), (1, 1)], dimension_numbers=dn)
    out = jnp.maximum(bn(out, raw["s2"], raw["b2"]), 0.0)
    out = lax.conv_general_dilated(out, raw["w3_hwio"], (1, 1),
                                   [(0, 0), (0, 0)], dimension_numbers=dn)
    out = bn(out, raw["s3"], raw["b3"]) + x_nchw
    return jnp.maximum(out, 0.0)


# ------------------------------ param setup --------------------------------- #

def make_raw_params(key, inplanes, planes, eps=1e-5):
    """Synthetic inference-mode parameters (conv weights in HWIO + BN affine)."""
    assert inplanes == 4 * planes, "residual path requires inplanes == 4*planes"
    ks = jax.random.split(key, 6)

    def bn_affine(k, c):
        kg, kb, km, kv = jax.random.split(k, 4)
        gamma = 1.0 + 0.1 * jax.random.normal(kg, (c,), jnp.float32)
        beta = 0.1 * jax.random.normal(kb, (c,), jnp.float32)
        mean = 0.05 * jax.random.normal(km, (c,), jnp.float32)
        var = jnp.abs(jax.random.normal(kv, (c,), jnp.float32)) + 1.0
        scale = gamma / jnp.sqrt(var + eps)
        bias = beta - mean * scale
        return scale, bias

    w1 = 0.1 * jax.random.normal(ks[0], (1, 1, inplanes, planes), jnp.float32)
    w2 = 0.1 * jax.random.normal(ks[1], (3, 3, planes, planes), jnp.float32)
    w3 = 0.1 * jax.random.normal(ks[2], (1, 1, planes, 4 * planes), jnp.float32)
    s1, b1 = bn_affine(ks[3], planes)
    s2, b2 = bn_affine(ks[4], planes)
    s3, b3 = bn_affine(ks[5], 4 * planes)
    return dict(w1_hwio=w1, w2_hwio=w2, w3_hwio=w3,
                s1=s1, b1=b1, s2=s2, b2=b2, s3=s3, b3=b3)


def fold_params(raw, sublane=8):
    """One-time host-side fold of BN scale into conv weights (transposed GEMM form).

    The bottleneck channel dim P is zero-padded to a multiple of 8 so all GEMM
    operands and intermediates inside the kernel are sublane-aligned.  The
    padded rows/columns are exactly zero, so the output is unchanged.
    """
    s1, s2, s3 = raw["s1"], raw["s2"], raw["s3"]
    w1 = raw["w1_hwio"][0, 0]          # (Cin, P)
    w2 = raw["w2_hwio"]                # (3, 3, P, P)  HWIO
    w3 = raw["w3_hwio"][0, 0]          # (P, 4P)
    cin, p = w1.shape
    cout = w3.shape[1]
    p_pad = ((p + sublane - 1) // sublane) * sublane

    w1t = jnp.zeros((p_pad, cin), jnp.float32).at[:p].set((w1 * s1[None, :]).T)
    b1 = jnp.zeros((p_pad, 1), jnp.float32).at[:p, 0].set(raw["b1"])

    w2flat = jnp.zeros((p_pad, 9 * p_pad), jnp.float32)
    k = 0
    for dh in range(3):
        for dw in range(3):
            wt = (w2[dh, dw] * s2[None, :]).T                        # (P_out, P_in)
            w2flat = w2flat.at[:p, k * p_pad:k * p_pad + p].set(wt)
            k += 1
    b2 = jnp.zeros((p_pad, 1), jnp.float32).at[:p, 0].set(raw["b2"])

    w3t = jnp.zeros((cout, p_pad), jnp.float32).at[:, :p].set((w3 * s3[None, :]).T)
    b3 = raw["b3"].reshape(-1, 1)
    return dict(w1t=w1t, w2flat=w2flat, w3t=w3t, b1=b1, b2=b2, b3=b3)


# --------------------------------- main -------------------------------------- #

if __name__ == "__main__":
    N, H, W = 2, 16, 16
    planes = 4
    inplanes = 4 * planes        # 16 — downsample is None, residual channels match

    key = jax.random.PRNGKey(0)
    kx, kp = jax.random.split(key)
    x_nchw = jax.random.normal(kx, (N, inplanes, H, W), jnp.float32)   # PyTorch NCHW

    raw = make_raw_params(kp, inplanes, planes)
    folded = fold_params(raw)

    out = jax.block_until_ready(bottleneck_pallas(x_nchw, folded))
    ref = jax.block_until_ready(bottleneck_ref(x_nchw, raw))

    np.testing.assert_allclose(np.asarray(out), np.asarray(ref),
                               rtol=2e-4, atol=2e-4)
    print("KERNEL_OK")
</pallas_src>

<mosaic_0001>
module attributes {stable_mosaic.version = 11 : i64} {
  func.func @_bottleneck_kernel(%arg0: i32, %arg1: memref<1x16x256xf32, #tpu.memory_space<vmem>>, %arg2: memref<8x16xf32, #tpu.memory_space<vmem>>, %arg3: memref<8x72xf32, #tpu.memory_space<vmem>>, %arg4: memref<16x8xf32, #tpu.memory_space<vmem>>, %arg5: memref<8x1xf32, #tpu.memory_space<vmem>>, %arg6: memref<8x1xf32, #tpu.memory_space<vmem>>, %arg7: memref<16x1xf32, #tpu.memory_space<vmem>>, %arg8: memref<1x16x256xf32, #tpu.memory_space<vmem>>) attributes {dimension_semantics = [#tpu.dimension_semantics<parallel>], iteration_bounds = array<i64: 2>, scalar_prefetch = 0 : i64, scratch_operands = 0 : i64, tpu.core_type = #tpu.core_type<tc>, window_params = [{transform_indices = @transform_0, window_bounds = array<i64: 1, 16, 256>}, {pipeline_mode = #tpu.pipeline_mode<synchronous>, transform_indices = @transform_1, window_bounds = array<i64: 8, 16>}, {pipeline_mode = #tpu.pipeline_mode<synchronous>, transform_indices = @transform_2, window_bounds = array<i64: 8, 72>}, {pipeline_mode = #tpu.pipeline_mode<synchronous>, transform_indices = @transform_3, window_bounds = array<i64: 16, 8>}, {pipeline_mode = #tpu.pipeline_mode<synchronous>, transform_indices = @transform_4, window_bounds = array<i64: 8, 1>}, {pipeline_mode = #tpu.pipeline_mode<synchronous>, transform_indices = @transform_5, window_bounds = array<i64: 8, 1>}, {pipeline_mode = #tpu.pipeline_mode<synchronous>, transform_indices = @transform_6, window_bounds = array<i64: 16, 1>}, {transform_indices = @transform_7, window_bounds = array<i64: 1, 16, 256>}]} {
    %c0 = arith.constant 0 : index
    %c0_0 = arith.constant 0 : index
    %c0_1 = arith.constant 0 : index
    %0 = vector.load %arg1[%c0, %c0_0, %c0_1] : memref<1x16x256xf32, #tpu.memory_space<vmem>>, vector<1x16x256xf32>
    %1 = vector.shape_cast %0 : vector<1x16x256xf32> to vector<16x256xf32>
    %c0_2 = arith.constant 0 : index
    %c0_3 = arith.constant 0 : index
    %2 = vector.load %arg2[%c0_2, %c0_3] : memref<8x16xf32, #tpu.memory_space<vmem>>, vector<8x16xf32>
    %cst = arith.constant dense<0.000000e+00> : vector<8x256xf32>
    %3 = tpu.matmul %2, %1, %cst {dimension_numbers = #tpu.dot_dimension_numbers<[1], [0], [0], [1], [0, 0, 1, 1], [], []>} : vector<8x16xf32>, vector<16x256xf32>, vector<8x256xf32> -> vector<8x256xf32>
    %c0_4 = arith.constant 0 : index
    %c0_5 = arith.constant 0 : index
    %4 = vector.load %arg5[%c0_4, %c0_5] : memref<8x1xf32, #tpu.memory_space<vmem>>, vector<8x1xf32>
    %5 = vector.broadcast %4 : vector<8x1xf32> to vector<8x256xf32>
    %6 = arith.addf %3, %5 : vector<8x256xf32>
    %cst_6 = arith.constant 0.000000e+00 : f32
    %7 = vector.broadcast %cst_6 : f32 to vector<8x256xf32>
    %8 = arith.maximumf %6, %7 : vector<8x256xf32>
    %9 = tpu.iota {dimensions = array<i32: 1>} : vector<1x256xi32>
    %c16_i32 = arith.constant 16 : i32
    %c0_i32 = arith.constant 0 : i32
    %10 = arith.cmpi eq, %c16_i32, %c0_i32 : i32
    %c1_i32 = arith.constant 1 : i32
    %11 = arith.select %10, %c1_i32, %c16_i32 : i32
    %12 = vector.broadcast %11 : i32 to vector<1x256xi32>
    %13 = arith.remsi %9, %12 : vector<1x256xi32>
    %c0_i32_7 = arith.constant 0 : i32
    %14 = vector.broadcast %c0_i32_7 : i32 to vector<1x256xi32>
    %15 = arith.cmpi ne, %13, %14 : vector<1x256xi32>
    %c0_i32_8 = arith.constant 0 : i32
    %16 = vector.broadcast %c0_i32_8 : i32 to vector<1x256xi32>
    %17 = arith.cmpi slt, %13, %16 : vector<1x256xi32>
    %c0_i32_9 = arith.constant 0 : i32
    %18 = arith.cmpi slt, %11, %c0_i32_9 : i32
    %19 = vector.broadcast %18 : i1 to vector<1x256xi1>
    %20 = vector.broadcast %19 : vector<1x256xi1> to vector<1x256xi1>
    %21 = arith.xori %17, %20 : vector<1x256xi1>
    %22 = arith.andi %21, %15 : vector<1x256xi1>
    %23 = vector.broadcast %11 : i32 to vector<1x256xi32>
    %24 = arith.addi %13, %23 : vector<1x256xi32>
    %25 = arith.select %22, %24, %13 : vector<1x256xi1>, vector<1x256xi32>
    %c17_i32 = arith.constant 17 : i32
    %26 = tpu.dynamic_rotate %8 by %c17_i32 dim 1 : vector<8x256xf32>, i32 -> vector<8x256xf32>
    %c-17_i32 = arith.constant -17 : i32
    %27 = vector.broadcast %c-17_i32 : i32 to vector<1x256xi32>
    %28 = arith.addi %9, %27 : vector<1x256xi32>
    %c0_i32_10 = arith.constant 0 : i32
    %29 = vector.broadcast %c0_i32_10 : i32 to vector<1x256xi32>
    %30 = arith.cmpi sge, %28, %29 : vector<1x256xi32>
    %c-17_i32_11 = arith.constant -17 : i32
    %31 = vector.broadcast %c-17_i32_11 : i32 to vector<1x256xi32>
    %32 = arith.addi %9, %31 : vector<1x256xi32>
    %c256_i32 = arith.constant 256 : i32
    %33 = vector.broadcast %c256_i32 : i32 to vector<1x256xi32>
    %34 = arith.cmpi slt, %32, %33 : vector<1x256xi32>
    %35 = arith.andi %30, %34 : vector<1x256xi1>
    %c-1_i32 = arith.constant -1 : i32
    %36 = vector.broadcast %c-1_i32 : i32 to vector<1x256xi32>
    %37 = arith.addi %25, %36 : vector<1x256xi32>
    %c0_i32_12 = arith.constant 0 : i32
    %38 = vector.broadcast %c0_i32_12 : i32 to vector<1x256xi32>
    %39 = arith.cmpi sge, %37, %38 : vector<1x256xi32>
    %40 = arith.andi %35, %39 : vector<1x256xi1>
    %c-1_i32_13 = arith.constant -1 : i32
    %41 = vector.broadcast %c-1_i32_13 : i32 to vector<1x256xi32>
    %42 = arith.addi %25, %41 : vector<1x256xi32>
    %c16_i32_14 = arith.constant 16 : i32
    %43 = vector.broadcast %c16_i32_14 : i32 to vector<1x256xi32>
    %44 = arith.cmpi slt, %42, %43 : vector<1x256xi32>
    %45 = arith.andi %40, %44 : vector<1x256xi1>
    %46 = arith.extui %45 : vector<1x256xi1> to vector<1x256xi32>
    %47 = arith.sitofp %46 : vector<1x256xi32> to vector<1x256xf32>
    %48 = vector.broadcast %47 : vector<1x256xf32> to vector<8x256xf32>
    %49 = arith.mulf %26, %48 : vector<8x256xf32>
    %c16_i32_15 = arith.constant 16 : i32
    %50 = tpu.dynamic_rotate %8 by %c16_i32_15 dim 1 : vector<8x256xf32>, i32 -> vector<8x256xf32>
    %c-16_i32 = arith.constant -16 : i32
    %51 = vector.broadcast %c-16_i32 : i32 to vector<1x256xi32>
    %52 = arith.addi %9, %51 : vector<1x256xi32>
    %c0_i32_16 = arith.constant 0 : i32
    %53 = vector.broadcast %c0_i32_16 : i32 to vector<1x256xi32>
    %54 = arith.cmpi sge, %52, %53 : vector<1x256xi32>
    %c-16_i32_17 = arith.constant -16 : i32
    %55 = vector.broadcast %c-16_i32_17 : i32 to vector<1x256xi32>
    %56 = arith.addi %9, %55 : vector<1x256xi32>
    %c256_i32_18 = arith.constant 256 : i32
    %57 = vector.broadcast %c256_i32_18 : i32 to vector<1x256xi32>
    %58 = arith.cmpi slt, %56, %57 : vector<1x256xi32>
    %59 = arith.andi %54, %58 : vector<1x256xi1>
    %60 = arith.extui %59 : vector<1x256xi1> to vector<1x256xi32>
    %61 = arith.sitofp %60 : vector<1x256xi32> to vector<1x256xf32>
    %62 = vector.broadcast %61 : vector<1x256xf32> to vector<8x256xf32>
    %63 = arith.mulf %50, %62 : vector<8x256xf32>
    %c15_i32 = arith.constant 15 : i32
    %64 = tpu.dynamic_rotate %8 by %c15_i32 dim 1 : vector<8x256xf32>, i32 -> vector<8x256xf32>
    %c-15_i32 = arith.constant -15 : i32
    %65 = vector.broadcast %c-15_i32 : i32 to vector<1x256xi32>
    %66 = arith.addi %9, %65 : vector<1x256xi32>
    %c0_i32_19 = arith.constant 0 : i32
    %67 = vector.broadcast %c0_i32_19 : i32 to vector<1x256xi32>
    %68 = arith.cmpi sge, %66, %67 : vector<1x256xi32>
    %c-15_i32_20 = arith.constant -15 : i32
    %69 = vector.broadcast %c-15_i32_20 : i32 to vector<1x256xi32>
    %70 = arith.addi %9, %69 : vector<1x256xi32>
    %c256_i32_21 = arith.constant 256 : i32
    %71 = vector.broadcast %c256_i32_21 : i32 to vector<1x256xi32>
    %72 = arith.cmpi slt, %70, %71 : vector<1x256xi32>
    %73 = arith.andi %68, %72 : vector<1x256xi1>
    %c1_i32_22 = arith.constant 1 : i32
    %74 = vector.broadcast %c1_i32_22 : i32 to vector<1x256xi32>
    %75 = arith.addi %25, %74 : vector<1x256xi32>
    %c0_i32_23 = arith.constant 0 : i32
    %76 = vector.broadcast %c0_i32_23 : i32 to vector<1x256xi32>
    %77 = arith.cmpi sge, %75, %76 : vector<1x256xi32>
    %78 = arith.andi %73, %77 : vector<1x256xi1>
    %c1_i32_24 = arith.constant 1 : i32
    %79 = vector.broadcast %c1_i32_24 : i32 to vector<1x256xi32>
    %80 = arith.addi %25, %79 : vector<1x256xi32>
    %c16_i32_25 = arith.constant 16 : i32
    %81 = vector.broadcast %c16_i32_25 : i32 to vector<1x256xi32>
    %82 = arith.cmpi slt, %80, %81 : vector<1x256xi32>
    %83 = arith.andi %78, %82 : vector<1x256xi1>
    %84 = arith.extui %83 : vector<1x256xi1> to vector<1x256xi32>
    %85 = arith.sitofp %84 : vector<1x256xi32> to vector<1x256xf32>
    %86 = vector.broadcast %85 : vector<1x256xf32> to vector<8x256xf32>
    %87 = arith.mulf %64, %86 : vector<8x256xf32>
    %c1_i32_26 = arith.constant 1 : i32
    %88 = tpu.dynamic_rotate %8 by %c1_i32_26 dim 1 : vector<8x256xf32>, i32 -> vector<8x256xf32>
    %c-1_i32_27 = arith.constant -1 : i32
    %89 = vector.broadcast %c-1_i32_27 : i32 to vector<1x256xi32>
    %90 = arith.addi %9, %89 : vector<1x256xi32>
    %c0_i32_28 = arith.constant 0 : i32
    %91 = vector.broadcast %c0_i32_28 : i32 to vector<1x256xi32>
    %92 = arith.cmpi sge, %90, %91 : vector<1x256xi32>
    %c-1_i32_29 = arith.constant -1 : i32
    %93 = vector.broadcast %c-1_i32_29 : i32 to vector<1x256xi32>
    %94 = arith.addi %9, %93 : vector<1x256xi32>
    %c256_i32_30 = arith.constant 256 : i32
    %95 = vector.broadcast %c256_i32_30 : i32 to vector<1x256xi32>
    %96 = arith.cmpi slt, %94, %95 : vector<1x256xi32>
    %97 = arith.andi %92, %96 : vector<1x256xi1>
    %c-1_i32_31 = arith.constant -1 : i32
    %98 = vector.broadcast %c-1_i32_31 : i32 to vector<1x256xi32>
    %99 = arith.addi %25, %98 : vector<1x256xi32>
    %c0_i32_32 = arith.constant 0 : i32
    %100 = vector.broadcast %c0_i32_32 : i32 to vector<1x256xi32>
    %101 = arith.cmpi sge, %99, %100 : vector<1x256xi32>
    %102 = arith.andi %97, %101 : vector<1x256xi1>
    %c-1_i32_33 = arith.constant -1 : i32
    %103 = vector.broadcast %c-1_i32_33 : i32 to vector<1x256xi32>
    %104 = arith.addi %25, %103 : vector<1x256xi32>
    %c16_i32_34 = arith.constant 16 : i32
    %105 = vector.broadcast %c16_i32_34 : i32 to vector<1x256xi32>
    %106 = arith.cmpi slt, %104, %105 : vector<1x256xi32>
    %107 = arith.andi %102, %106 : vector<1x256xi1>
    %108 = arith.extui %107 : vector<1x256xi1> to vector<1x256xi32>
    %109 = arith.sitofp %108 : vector<1x256xi32> to vector<1x256xf32>
    %110 = vector.broadcast %109 : vector<1x256xf32> to vector<8x256xf32>
    %111 = arith.mulf %88, %110 : vector<8x256xf32>
    %c255_i32 = arith.constant 255 : i32
    %112 = tpu.dynamic_rotate %8 by %c255_i32 dim 1 : vector<8x256xf32>, i32 -> vector<8x256xf32>
    %c1_i32_35 = arith.constant 1 : i32
    %113 = vector.broadcast %c1_i32_35 : i32 to vector<1x256xi32>
    %114 = arith.addi %9, %113 : vector<1x256xi32>
    %c0_i32_36 = arith.constant 0 : i32
    %115 = vector.broadcast %c0_i32_36 : i32 to vector<1x256xi32>
    %116 = arith.cmpi sge, %114, %115 : vector<1x256xi32>
    %c1_i32_37 = arith.constant 1 : i32
    %117 = vector.broadcast %c1_i32_37 : i32 to vector<1x256xi32>
    %118 = arith.addi %9, %117 : vector<1x256xi32>
    %c256_i32_38 = arith.constant 256 : i32
    %119 = vector.broadcast %c256_i32_38 : i32 to vector<1x256xi32>
    %120 = arith.cmpi slt, %118, %119 : vector<1x256xi32>
    %121 = arith.andi %116, %120 : vector<1x256xi1>
    %c1_i32_39 = arith.constant 1 : i32
    %122 = vector.broadcast %c1_i32_39 : i32 to vector<1x256xi32>
    %123 = arith.addi %25, %122 : vector<1x256xi32>
    %c0_i32_40 = arith.constant 0 : i32
    %124 = vector.broadcast %c0_i32_40 : i32 to vector<1x256xi32>
    %125 = arith.cmpi sge, %123, %124 : vector<1x256xi32>
    %126 = arith.andi %121, %125 : vector<1x256xi1>
    %c1_i32_41 = arith.constant 1 : i32
    %127 = vector.broadcast %c1_i32_41 : i32 to vector<1x256xi32>
    %128 = arith.addi %25, %127 : vector<1x256xi32>
    %c16_i32_42 = arith.constant 16 : i32
    %129 = vector.broadcast %c16_i32_42 : i32 to vector<1x256xi32>
    %130 = arith.cmpi slt, %128, %129 : vector<1x256xi32>
    %131 = arith.andi %126, %130 : vector<1x256xi1>
    %132 = arith.extui %131 : vector<1x256xi1> to vector<1x256xi32>
    %133 = arith.sitofp %132 : vector<1x256xi32> to vector<1x256xf32>
    %134 = vector.broadcast %133 : vector<1x256xf32> to vector<8x256xf32>
    %135 = arith.mulf %112, %134 : vector<8x256xf32>
    %c241_i32 = arith.constant 241 : i32
    %136 = tpu.dynamic_rotate %8 by %c241_i32 dim 1 : vector<8x256xf32>, i32 -> vector<8x256xf32>
    %c15_i32_43 = arith.constant 15 : i32
    %137 = vector.broadcast %c15_i32_43 : i32 to vector<1x256xi32>
    %138 = arith.addi %9, %137 : vector<1x256xi32>
    %c0_i32_44 = arith.constant 0 : i32
    %139 = vector.broadcast %c0_i32_44 : i32 to vector<1x256xi32>
    %140 = arith.cmpi sge, %138, %139 : vector<1x256xi32>
    %c15_i32_45 = arith.constant 15 : i32
    %141 = vector.broadcast %c15_i32_45 : i32 to vector<1x256xi32>
    %142 = arith.addi %9, %141 : vector<1x256xi32>
    %c256_i32_46 = arith.constant 256 : i32
    %143 = vector.broadcast %c256_i32_46 : i32 to vector<1x256xi32>
    %144 = arith.cmpi slt, %142, %143 : vector<1x256xi32>
    %145 = arith.andi %140, %144 : vector<1x256xi1>
    %c-1_i32_47 = arith.constant -1 : i32
    %146 = vector.broadcast %c-1_i32_47 : i32 to vector<1x256xi32>
    %147 = arith.addi %25, %146 : vector<1x256xi32>
    %c0_i32_48 = arith.constant 0 : i32
    %148 = vector.broadcast %c0_i32_48 : i32 to vector<1x256xi32>
    %149 = arith.cmpi sge, %147, %148 : vector<1x256xi32>
    %150 = arith.andi %145, %149 : vector<1x256xi1>
    %c-1_i32_49 = arith.constant -1 : i32
    %151 = vector.broadcast %c-1_i32_49 : i32 to vector<1x256xi32>
    %152 = arith.addi %25, %151 : vector<1x256xi32>
    %c16_i32_50 = arith.constant 16 : i32
    %153 = vector.broadcast %c16_i32_50 : i32 to vector<1x256xi32>
    %154 = arith.cmpi slt, %152, %153 : vector<1x256xi32>
    %155 = arith.andi %150, %154 : vector<1x256xi1>
    %156 = arith.extui %155 : vector<1x256xi1> to vector<1x256xi32>
    %157 = arith.sitofp %156 : vector<1x256xi32> to vector<1x256xf32>
    %158 = vector.broadcast %157 : vector<1x256xf32> to vector<8x256xf32>
    %159 = arith.mulf %136, %158 : vector<8x256xf32>
    %c240_i32 = arith.constant 240 : i32
    %160 = tpu.dynamic_rotate %8 by %c240_i32 dim 1 : vector<8x256xf32>, i32 -> vector<8x256xf32>
    %c16_i32_51 = arith.constant 16 : i32
    %161 = vector.broadcast %c16_i32_51 : i32 to vector<1x256xi32>
    %162 = arith.addi %9, %161 : vector<1x256xi32>
    %c0_i32_52 = arith.constant 0 : i32
    %163 = vector.broadcast %c0_i32_52 : i32 to vector<1x256xi32>
    %164 = arith.cmpi sge, %162, %163 : vector<1x256xi32>
    %c16_i32_53 = arith.constant 16 : i32
    %165 = vector.broadcast %c16_i32_53 : i32 to vector<1x256xi32>
    %166 = arith.addi %9, %165 : vector<1x256xi32>
    %c256_i32_54 = arith.constant 256 : i32
    %167 = vector.broadcast %c256_i32_54 : i32 to vector<1x256xi32>
    %168 = arith.cmpi slt, %166, %167 : vector<1x256xi32>
    %169 = arith.andi %164, %168 : vector<1x256xi1>
    %170 = arith.extui %169 : vector<1x256xi1> to vector<1x256xi32>
    %171 = arith.sitofp %170 : vector<1x256xi32> to vector<1x256xf32>
    %172 = vector.broadcast %171 : vector<1x256xf32> to vector<8x256xf32>
    %173 = arith.mulf %160, %172 : vector<8x256xf32>
    %c239_i32 = arith.constant 239 : i32
    %174 = tpu.dynamic_rotate %8 by %c239_i32 dim 1 : vector<8x256xf32>, i32 -> vector<8x256xf32>
    %c17_i32_55 = arith.constant 17 : i32
    %175 = vector.broadcast %c17_i32_55 : i32 to vector<1x256xi32>
    %176 = arith.addi %9, %175 : vector<1x256xi32>
    %c0_i32_56 = arith.constant 0 : i32
    %177 = vector.broadcast %c0_i32_56 : i32 to vector<1x256xi32>
    %178 = arith.cmpi sge, %176, %177 : vector<1x256xi32>
    %c17_i32_57 = arith.constant 17 : i32
    %179 = vector.broadcast %c17_i32_57 : i32 to vector<1x256xi32>
    %180 = arith.addi %9, %179 : vector<1x256xi32>
    %c256_i32_58 = arith.constant 256 : i32
    %181 = vector.broadcast %c256_i32_58 : i32 to vector<1x256xi32>
    %182 = arith.cmpi slt, %180, %181 : vector<1x256xi32>
    %183 = arith.andi %178, %182 : vector<1x256xi1>
    %c1_i32_59 = arith.constant 1 : i32
    %184 = vector.broadcast %c1_i32_59 : i32 to vector<1x256xi32>
    %185 = arith.addi %25, %184 : vector<1x256xi32>
    %c0_i32_60 = arith.constant 0 : i32
    %186 = vector.broadcast %c0_i32_60 : i32 to vector<1x256xi32>
    %187 = arith.cmpi sge, %185, %186 : vector<1x256xi32>
    %188 = arith.andi %183, %187 : vector<1x256xi1>
    %c1_i32_61 = arith.constant 1 : i32
    %189 = vector.broadcast %c1_i32_61 : i32 to vector<1x256xi32>
    %190 = arith.addi %25, %189 : vector<1x256xi32>
    %c16_i32_62 = arith.constant 16 : i32
    %191 = vector.broadcast %c16_i32_62 : i32 to vector<1x256xi32>
    %192 = arith.cmpi slt, %190, %191 : vector<1x256xi32>
    %193 = arith.andi %188, %192 : vector<1x256xi1>
    %194 = arith.extui %193 : vector<1x256xi1> to vector<1x256xi32>
    %195 = arith.sitofp %194 : vector<1x256xi32> to vector<1x256xf32>
    %196 = vector.broadcast %195 : vector<1x256xf32> to vector<8x256xf32>
    %197 = arith.mulf %174, %196 : vector<8x256xf32>
    %198 = tpu.concatenate %49, %63, %87, %111, %8, %135, %159, %173, %197 in 0 : vector<8x256xf32>, vector<8x256xf32>, vector<8x256xf32>, vector<8x256xf32>, vector<8x256xf32>, vector<8x256xf32>, vector<8x256xf32>, vector<8x256xf32>, vector<8x256xf32> -> vector<72x256xf32>
    %c0_63 = arith.constant 0 : index
    %c0_64 = arith.constant 0 : index
    %199 = vector.load %arg3[%c0_63, %c0_64] : memref<8x72xf32, #tpu.memory_space<vmem>>, vector<8x72xf32>
    %cst_65 = arith.constant dense<0.000000e+00> : vector<8x256xf32>
    %200 = tpu.matmul %199, %198, %cst_65 {dimension_numbers = #tpu.dot_dimension_numbers<[1], [0], [0], [1], [0, 0, 1, 1], [], []>} : vector<8x72xf32>, vector<72x256xf32>, vector<8x256xf32> -> vector<8x256xf32>
    %c0_66 = arith.constant 0 : index
    %c0_67 = arith.constant 0 : index
    %201 = vector.load %arg6[%c0_66, %c0_67] : memref<8x1xf32, #tpu.memory_space<vmem>>, vector<8x1xf32>
    %202 = vector.broadcast %201 : vector<8x1xf32> to vector<8x256xf32>
    %203 = arith.addf %200, %202 : vector<8x256xf32>
    %cst_68 = arith.constant 0.000000e+00 : f32
    %204 = vector.broadcast %cst_68 : f32 to vector<8x256xf32>
    %205 = arith.maximumf %203, %204 : vector<8x256xf32>
    %c0_69 = arith.constant 0 : index
    %c0_70 = arith.constant 0 : index
    %206 = vector.load %arg4[%c0_69, %c0_70] : memref<16x8xf32, #tpu.memory_space<vmem>>, vector<16x8xf32>
    %cst_71 = arith.constant dense<0.000000e+00> : vector<16x256xf32>
    %207 = tpu.matmul %206, %205, %cst_71 {dimension_numbers = #tpu.dot_dimension_numbers<[1], [0], [0], [1], [0, 0, 1, 1], [], []>} : vector<16x8xf32>, vector<8x256xf32>, vector<16x256xf32> -> vector<16x256xf32>
    %c0_72 = arith.constant 0 : index
    %c0_73 = arith.constant 0 : index
    %208 = vector.load %arg7[%c0_72, %c0_73] : memref<16x1xf32, #tpu.memory_space<vmem>>, vector<16x1xf32>
    %209 = vector.broadcast %208 : vector<16x1xf32> to vector<16x256xf32>
    %210 = arith.addf %207, %209 : vector<16x256xf32>
    %211 = arith.addf %210, %1 : vector<16x256xf32>
    %cst_74 = arith.constant 0.000000e+00 : f32
    %212 = vector.broadcast %cst_74 : f32 to vector<16x256xf32>
    %213 = arith.maximumf %211, %212 : vector<16x256xf32>
    %c0_75 = arith.constant 0 : index
    %c0_76 = arith.constant 0 : index
    %c0_77 = arith.constant 0 : index
    %214 = vector.load %arg8[%c0_75, %c0_76, %c0_77] : memref<1x16x256xf32, #tpu.memory_space<vmem>>, vector<1x16x256xf32>
    %215 = vector.shape_cast %214 : vector<1x16x256xf32> to vector<16x256xf32>
    %216 = vector.shape_cast %213 : vector<16x256xf32> to vector<1x16x256xf32>
    tpu.vector_store %arg8[%c0_75, %c0_76, %c0_77], %216 {strides = array<i32>} : memref<1x16x256xf32, #tpu.memory_space<vmem>>, vector<1x16x256xf32>,
    return
  }
  func.func @transform_0(%arg0: i32) -> (i32, i32, i32) {
    %c0_i32 = arith.constant 0 : i32
    %c0_i32_0 = arith.constant 0 : i32
    %c0_i32_1 = arith.constant 0 : i32
    return %arg0, %c0_i32, %c0_i32_0 : i32, i32, i32
  }
  func.func @transform_1(%arg0: i32) -> (i32, i32) {
    %c0_i32 = arith.constant 0 : i32
    %c0_i32_0 = arith.constant 0 : i32
    %c0_i32_1 = arith.constant 0 : i32
    return %c0_i32, %c0_i32_0 : i32, i32
  }
  func.func @transform_2(%arg0: i32) -> (i32, i32) {
    %c0_i32 = arith.constant 0 : i32
    %c0_i32_0 = arith.constant 0 : i32
    %c0_i32_1 = arith.constant 0 : i32
    return %c0_i32, %c0_i32_0 : i32, i32
  }
  func.func @transform_3(%arg0: i32) -> (i32, i32) {
    %c0_i32 = arith.constant 0 : i32
    %c0_i32_0 = arith.constant 0 : i32
    %c0_i32_1 = arith.constant 0 : i32
    return %c0_i32, %c0_i32_0 : i32, i32
  }
  func.func @transform_4(%arg0: i32) -> (i32, i32) {
    %c0_i32 = arith.constant 0 : i32
    %c0_i32_0 = arith.constant 0 : i32
    %c0_i32_1 = arith.constant 0 : i32
    return %c0_i32, %c0_i32_0 : i32, i32
  }
  func.func @transform_5(%arg0: i32) -> (i32, i32) {
    %c0_i32 = arith.constant 0 : i32
    %c0_i32_0 = arith.constant 0 : i32
    %c0_i32_1 = arith.constant 0 : i32
    return %c0_i32, %c0_i32_0 : i32, i32
  }
  func.func @transform_6(%arg0: i32) -> (i32, i32) {
    %c0_i32 = arith.constant 0 : i32
    %c0_i32_0 = arith.constant 0 : i32
    %c0_i32_1 = arith.constant 0 : i32
    return %c0_i32, %c0_i32_0 : i32, i32
  }
  func.func @transform_7(%arg0: i32) -> (i32, i32, i32) {
    %c0_i32 = arith.constant 0 : i32
    %c0_i32_0 = arith.constant 0 : i32
    %c0_i32_1 = arith.constant 0 : i32
    return %arg0, %c0_i32, %c0_i32_0 : i32, i32, i32
  }
}

</mosaic_0001>

<bundles_post_ra>
// kernel: tpu_custom_call.1
= control target key start
LH: loop header
LB: loop body
LE: loop exit
PB: predicated region body
PF: predicated region fallthrough
CT: control target
= control target key end

     0   :  { %12 = vsyncpa [#allocation3], 0  ;;  %s1448_s0 = inlined_call_operand.hbm [shape: f32[2,16,256], index: 0, kind: input, shape index: {}]   ;;  %s1449_s1 = inlined_call_operand.vmem [shape: f32[8,16], index: 1, kind: input, shape index: {}]   ;;  %s1450_s2 = inlined_call_operand.vmem [shape: f32[8,72], index: 2, kind: input, shape index: {}]   ;;  %s1451_s3 = inlined_call_operand.vmem [shape: f32[16,8], index: 3, kind: input, shape index: {}]   ;;  %s1452_s4 = inlined_call_operand.vmem [shape: f32[8,1], index: 4, kind: input, shape index: {}]   ;;  %s1453_s5 = inlined_call_operand.vmem [shape: f32[8,1], index: 5, kind: input, shape index: {}]   ;;  %s1454_s6 = inlined_call_operand.vmem [shape: f32[16,1], index: 6, kind: input, shape index: {}]   ;;  %s1455_s7 = inlined_call_operand.hbm [shape: f32[2,16,256], index: 7, kind: output, shape index: {}]  }
   0x1   :  { %14 = vsyncpa [#allocation3 + $0x1], 0 }
   0x2   :  { %15 = vsyncpa [#allocation4], 0 }
   0x3   :  { %17 = vsyncpa [#allocation4 + $0x1], 0  ;;  %s1141_s24 = smov 0   ;;  %s1143_s25 = smov 0  }
   0x4   :  { %s1145_s26 = smov 0   ;;  %s1147_s27 = smov 0  }
   0x5 LB: > { %s1162_s28 = sadd.s32 4294967295, %s1084_s27   ;;  %s897_s29 = sadd.s32 4294967294, %s1084_s27   ;;  %s1084_s27 = sphi %s1147_s27, %s1470_s27   ;;  %s1080_s26 = sphi %s1145_s26, %s1469_s26   ;;  %s1076_s25 = sphi %s1143_s25, %s1468_s25   ;;  %s1072_s24 = sphi %s1141_s24, %s1467_s24  }
   0x6   : > { %s1166_s30 = sadd.s32 1, %s1084_s27   ;;  %s30_s8 = sadd.s32 1, %s1080_s26 }
   0x7   : > { %s27_s9 = ssub.s32 %s1084_s27, %s1166_s30  ;;  %p37_p0 = scmp.ne.s32.totalorder %s1080_s26, %s1076_s25 }
   0x8   : > { %p28_p1 = scmp.eq.s32.totalorder %s27_s9, 0  ;;  %p38_p2 = scmp.eq.s32.totalorder %s1084_s27, 0 }
   0x9   : > { %p43_p3 = scmp.ne.s32.totalorder %s1076_s25, %s1072_s24  ;;  %p44_p4 = scmp.eq.s32.totalorder %s1162_s28, 0 }
   0xa   : > { %s1178_s10 = scalar_select %p28_p1, %s1080_s26, %s30_s8  }
   0xb   : > { %p1180_p5 = por %p38_p2, %p37_p0  ;;  %p1184_p6 = por %p44_p4, %p43_p3 }
   0xc   : > { %p193_p7 = scmp.eq.s32.totalorder %s1162_s28, 1  ;;  %p199_p8 = scmp.eq.s32.totalorder %s897_s29, 1 }
   0xd   : > { %s1459_s12 = scalar_select %p1184_p6, 1, 0 }
   0xe   : > { %p943_p10 = scmp.lt.s32.totalorder %s1084_s27, 2  ;;  %p1191_p11 = por %p193_p7, %p37_p0 }
   0xf   : > { %p1195_p12 = por %p199_p8, %p43_p3  ;;  %s237_s15 = sand.u32 1, %s1080_s26  }
  0x10   : > { %s1460_s13 = scalar_select %p1191_p11, 1, 0 }
  0x11   : > { %s1461_s14 = scalar_select %p1195_p12, 1, 0 }
  0x12   : > { %s929_s16 = sshll.u32 %s1084_s27, 9  ;;  %s900_s17 = sshll.u32 %s237_s15, 5 }
  0x13   : > { %s1204_s20 = scalar_lea.hbm %s1448_s0, %s929_s16  ;;  %s241_s21 = scalar_lea.vmem [#allocation2], %s900_s17 }
  0x14   : > { %s248_s22 = sshll.u32 %s241_s21, 4  ;;  %p1208_p13 = pnand %p943_p10, %p1180_p5  ;;  %s1212_s22 = int_to_ptr.vmem [resolvable:$true] %s248_s22 }
  0x15   : > { %s1214_s29 = scalar_lea.sflag [#allocation3], %s237_s15  ;;  %s992_s8 = scalar_lea.hbm %s1204_s20, 512 }
  0x16   : > { %p993_p0 = scmp.ne.s32.totalorder %s1204_s20, %s992_s8  ;;  %p994_p1 = pneg %p1208_p13 }
  0x17   : > { %s997_s17 = scalar_lea.hbm %s1448_s0, 1024  ;;  %p998_p4 = scmp.lt.s32.totalorder %s1204_s20, %s1448_s0 }
  0x18   : > { %p995_p2 = pnand %p994_p1, %p993_p0  ;;  %p999_p5 = scmp.lt.s32.totalorder %s997_s17, %s992_s8 }
  0x1a   : > { %p996_p3 = pneg %p995_p2  ;;  %p1000_p7 = por %p999_p5, %p998_p4 }
  0x1c   : > { %p1001_p8 = pnand %p1000_p7, %p996_p3 }
  0x1e   : > { %1004 = shalt.err (!%p1001_p8)
}
  0x1f   : > { %s1005_s15 = scalar_lea.vmem %s1212_s22, 512  ;;  %s1086_s19 = smov [#allocation2]  }
  0x20   : > { %p1006_p10 = scmp.ne.s32.totalorder %s1212_s22, %s1005_s15  ;;  %s1010_s21 = sshll.u32 %s1086_s19, 4  ;;  %s1011_s21 = int_to_ptr.vmem [resolvable:$false] %s1010_s21 }
  0x21   : > { %s1012_s9 = scalar_lea.vmem %s1011_s21, 1024  ;;  %p1013_p2 = scmp.lt.s32.totalorder %s1212_s22, %s1011_s21 }
  0x22   : > { %p1008_p9 = pnand %p1006_p10, %p994_p1  ;;  %p1014_p12 = scmp.lt.s32.totalorder %s1012_s9, %s1005_s15 }
  0x24   : > { %p1009_p0 = pneg %p1008_p9  ;;  %p1015_p11 = por %p1014_p12, %p1013_p2 }
  0x26   : > { %p1016_p6 = pnand %p1015_p11, %p1009_p0 }
  0x28   : > { %1019 = shalt.err (!%p1016_p6)
}
  0x29   : > { %s1087_s8 = smov 256   ;;  %s1088_s16 = smov 16  }
  0x2a   : > { %938 = dma.hbm_to_vmem [thread:$0]  (!%p1208_p13), %s1204_s20, 512, %s1212_s22, %s1214_s29, %s1087_s8, %s1087_s8, %s1088_s16  }
  0x2b   : > { %p903_p9 = scmp.ge.s32.totalorder %s1084_s27, 1  ;;  %p256_p1 = scmp.lt.s32.totalorder %s1084_s27, 3 }
  0x2d   : > { %p257_p3 = pnand %p903_p9, %p256_p1 }
  0x2e   : > { %s1238_s17 = sand.u32 (!%p257_p3), 1, %s1076_s25   ;;  %p1463_p6 = scmp.ne.s32.totalorder (!%p257_p3), %s1459_s12, 0 }
  0x2f   : > { %260 = sbr.rel (%p257_p3) target bundleno = 825 (0x339), region = 48  ;;  %s904_s11 = sshll.u32 (!%p257_p3), %s1238_s17, 5 }
  0x30   : > { %s263_s18 = scalar_lea.sflag (!%p257_p3), [#allocation3], %s1238_s17  ;;  %s266_s15 = scalar_lea.vmem (!%p257_p3), [#allocation2], %s904_s11 }
  0x34   : > { %1063 = dma.done.wait (%p1463_p6), %s263_s18, 512  }
  0x35   : > { %1065 = vsyncadd (%p1463_p6), %s263_s18, 4294966784  ;;  %v1089_v0 = vmov 0.0   ;;  %v1090_v1 = vmov 0   ;;  %v1250_v2 = vld [vmem:[%s266_s15 + $0x18] sm:$0xff]  ;;  %v1252_v3 = vld [vmem:[%s266_s15 + $0x10] sm:$0xff]  ;;  %vm308_vm0 = vcmask 130048   ;;  %v385_v18 = vlaneseq }
  0x36   : > { %376 = vmatprep.mubr.f32.mxu0 %v1089_v0  ;;  %990 = vset.pattern.permute.xlu0 %v1090_v1  ;;  %v1254_v4 = vld [vmem:[%s266_s15 + $0x8] sm:$0xff]  ;;  %v1257_v5 = vld [vmem:[%s266_s15] sm:$0xff]  ;;  %s1091_s29 = smov 112   ;;  %s1092_s19 = smov 111  }
  0x37   : > { %691 = vmatprep.mubr.f32.mxu1 %v1089_v0  ;;  %991 = vset.pattern.permute.xlu1 %v1090_v1  ;;  %v302_v6 = vld [vmem:[%s1452_s4] sm:$0xff]  ;;  %s1093_s21 = smov 113   ;;  %s1094_s9 = smov 127   ;;  %v703_v17 = vld [vmem:[%s1454_s6 + $0x8] sm:$0xff]  ;;  %v1300_v19 = vand.u32 127, %v385_v18 }
  0x38   : > { %340 = vmatprep.subr.mxu0 %v1250_v2  ;;  %v301_v7 = vld [vmem:[%s1449_s1] sm:$0xff]  ;;  %305 = vperm.xlu0 %990, %v302_v6   ;;  %s1095_s8 = smov 1   ;;  %s1096_s16 = smov 15  }
  0x39   : > { %341 = vmatpush1.msra.mxu0 %v1252_v3  ;;  %s1097_s18 = smov 16   ;;  %s1098_s15 = smov 17   ;;  %v702_v15 = vld [vmem:[%s1454_s6] sm:$0xff]  ;;  %v387_v20 = vadd.s32 128, %v1300_v19  ;;  %v392_v26 = vand.u32 15, %v1300_v19  ;;  %vm574_vm8 = vcmp.lt.s32.totalorder %v1300_v19, 112 }
  0x3a   : > { %342 = vmatprep.subr.mxu0 %v1254_v4  ;;  %v617_v16 = vld [vmem:[%s1453_s5] sm:$0xff]  ;;  %vm595_vm9 = vcmp.lt.s32.totalorder %v1300_v19, 111  ;;  %vm549_vm11 = vcmp.lt.s32.totalorder %v1300_v19, 113  ;;  %v502_v42 = vadd.s32 4294967295, %v1300_v19  ;;  %vm524_vm14 = vcmp.lt.s32.totalorder %v1300_v19, 127  ;;  %s296_s20 = scalar_lea.vmem [#allocation5], %s904_s11 }
  0x3b   : > { %343 = vmatpush1.msra.mxu0 %v1257_v5  ;;  %v399_v21 = vand.u32 15, %v387_v20  ;;  %v599_v25 = vadd.s32 17, %v387_v20  ;;  %v578_v28 = vadd.s32 16, %v387_v20  ;;  %v1306_v30 = vadd.s32 1, %v392_v26  ;;  %s824_s22 = sshll.u32 %s296_s20, 4  ;;  %s930_s23 = sshll.u32 %s1162_s28, 9  ;;  %s1399_s22 = int_to_ptr.vmem [resolvable:$true] %s824_s22 }
  0x3c   : > { %906 = vmatmul.mubr.msk.f32.vlgmr.msra.gmra.mxu0 %vm308_vm0, %v301_v7  ;;  %v553_v32 = vadd.s32 15, %v387_v20  ;;  %v528_v33 = vadd.s32 1, %v387_v20  ;;  %v1312_v36 = vadd.s32 4294967295, %v392_v26  ;;  %v471_v47 = vadd.s32 4294967281, %v1300_v19  ;;  %p1464_p12 = scmp.ne.s32.totalorder %s1460_s13, 0  ;;  %s1099_s28 = smov [#allocation5]  }
  0x3d   : > { %785 = vmatprep.mubr.f32.mxu0 %v1089_v0  ;;  %v1303_v24 = vadd.s32 1, %v399_v21  ;;  %v428_v31 = vadd.s32 4294967295, %v399_v21  ;;  %vm603_vm2 = vcmp.lt.s32.totalorder %v599_v25, 256  ;;  %vm485_vm4 = vcmp.lt.s32.totalorder %v1306_v30, 16 }
  0x3e   : > { %vm582_vm5 = vcmp.lt.s32.totalorder %v578_v28, 256  ;;  %vm557_vm7 = vcmp.lt.s32.totalorder %v553_v32, 256  ;;  %vm532_vm10 = vcmp.lt.s32.totalorder %v528_v33, 256  ;;  %v914_v38 = vsel %vm485_vm4, 1.0, %v1089_v0 }
  0x3f   : > { %vm486_vm1 = vcmp.lt.s32.totalorder %v1303_v24, 16  ;;  %vm430_vm6 = vcmp.ge.s32.totalorder %v428_v31, 0  ;;  %v918_v39 = vsel %vm582_vm5, 1.0, %v1089_v0  ;;  %vm429_vm13 = vcmp.ge.s32.totalorder %v1312_v36, 0 }
  0x40   : > { %vm609_vm3 = vmand %vm603_vm2, %vm486_vm1  ;;  %v916_v52 = vsel %vm429_vm13, 1.0, %v1089_v0  ;;  %vm504_vm0 = vcmp.ge.s32.totalorder %v502_v42, 0  ;;  %vm499_vm2 = vcmp.lt.s32.totalorder %v1300_v19, 1  ;;  %v419_v58 = vadd.s32 4294967279, %v1300_v19  ;;  %v700_v42 = vld [vmem:[%s1451_s3] sm:$0xff] }
  0x41   : > { %v920_v37 = vsel %vm609_vm3, 1.0, %v1089_v0  ;;  %vm561_vm12 = vmand %vm557_vm7, %vm430_vm6  ;;  %vm473_vm3 = vcmp.ge.s32.totalorder %v471_v47, 0  ;;  %v450_v63 = vadd.s32 4294967280, %v1300_v19  ;;  %vm468_vm7 = vcmp.lt.s32.totalorder %v1300_v19, 15 }
  0x42   : > { %vm538_vm15 = vmand %vm532_vm10, %vm486_vm1  ;;  %v917_v49 = vsel %vm561_vm12, 1.0, %v1089_v0  ;;  %vm416_vm10 = vcmp.lt.s32.totalorder %v1300_v19, 17  ;;  %vm714_vm12 = vcmask 64512  }
  0x43   : > { %v915_v56 = vsel %vm538_vm15, 1.0, %v1089_v0  ;;  %vm510_vm5 = vmand %vm504_vm0, %vm429_vm13 }
  0xb3   : > { %v306_v8 = vpop.permute.xlu0 %305 }
  0xfc   : > { %v378_v9 = vpop.f32.mrf.mxu0 }
  0xfd   : > { %v379_v10 = vadd.f32 %v378_v9, %v306_v8 }
  0xfe   : > { %v380_v11 = vpop.f32.mrf.mxu0 }
  0xff   : > { %v1269_v12 = vmax.f32 %v379_v10, 0.0  ;;  %v381_v13 = vadd.f32 %v380_v11, %v306_v8  ;;  %v908_v8 = vsel %vm430_vm6, 1.0, %v1089_v0  ;;  %v912_v11 = vsel %vm510_vm5, 1.0, %v1089_v0 }
 0x100   : > { %vm447_vm6 = vcmp.lt.s32.totalorder %v1300_v19, 16 }
 0x101   : > { %570 = vrot.lane.b32.xlu1 %v1269_v12, %s1091_s29  ;;  %591 = vrot.lane.b32.xlu0 %v1269_v12, %s1092_s19  ;;  %v1273_v14 = vmax.f32 %v381_v13, 0.0 }
 0x105   : > { %545 = vrot.lane.b32.xlu1 %v1269_v12, %s1093_s21  ;;  %572 = vrot.lane.b32.xlu0 %v1273_v14, %s1091_s29 }
 0x109   : > { %520 = vrot.lane.b32.xlu1 %v1269_v12, %s1094_s9  ;;  %547 = vrot.lane.b32.xlu0 %v1273_v14, %s1093_s21  ;;  %s811_s21 = scalar_lea.sflag [#allocation4], %s1238_s17 }
 0x10d   : > { %593 = vrot.lane.b32.xlu1 %v1273_v14, %s1092_s19  ;;  %522 = vrot.lane.b32.xlu0 %v1273_v14, %s1094_s9  ;;  %s1404_s19 = scalar_lea.hbm %s1455_s7, %s930_s23  ;;  %s1020_s9 = scalar_lea.vmem %s1399_s22, 512 }
 0x10e   : > { %p1021_p11 = scmp.ne.s32.totalorder %s1399_s22, %s1020_s9 }
 0x110   : > { %p1022_p13 = pnand %p1021_p11, %p1464_p12 }
 0x111   : > { %495 = vrot.lane.b32.xlu1 %v1269_v12, %s1095_s8  ;;  %497 = vrot.lane.b32.xlu0 %v1273_v14, %s1095_s8  ;;  %s1024_s8 = sshll.u32 %s1099_s28, 4  ;;  %s1025_s8 = int_to_ptr.vmem [resolvable:$false] %s1024_s8 }
 0x112   : > { %p1023_p4 = pneg %p1022_p13  ;;  %p1027_p5 = scmp.lt.s32.totalorder %s1399_s22, %s1025_s8 }
 0x115   : > { %464 = vrot.lane.b32.xlu1 %v1269_v12, %s1096_s16  ;;  %466 = vrot.lane.b32.xlu0 %v1273_v14, %s1096_s16  ;;  %s1026_s16 = scalar_lea.vmem %s1025_s8, 1024 }
 0x116   : > { %p1028_p7 = scmp.lt.s32.totalorder %s1026_s16, %s1020_s9 }
 0x118   : > { %p1029_p8 = por %p1028_p7, %p1027_p5 }
 0x119   : > { %443 = vrot.lane.b32.xlu1 %v1269_v12, %s1097_s18  ;;  %445 = vrot.lane.b32.xlu0 %v1273_v14, %s1097_s18 }
 0x11a   : > { %p1030_p10 = pnand %p1029_p8, %p1023_p4 }
 0x11d   : > { %412 = vrot.lane.b32.xlu1 %v1269_v12, %s1098_s15  ;;  %414 = vrot.lane.b32.xlu0 %v1273_v14, %s1098_s15 }
 0x121   : > { %706 = vperm.xlu0 %990, %v702_v15   ;;  %620 = vperm.xlu1 %991, %v617_v16   ;;  %v911_v15 = vsel %vm486_vm1, 1.0, %v1089_v0 }
 0x125   : > { %711 = vperm.xlu1 %991, %v703_v17  }
 0x173   : > { %v571_v22 = vpop.permute.xlu1 %570  ;;  %v592_v23 = vpop.permute.xlu0 %591 }
 0x177   : > { %v546_v27 = vpop.permute.xlu1 %545  ;;  %v573_v29 = vpop.permute.xlu0 %572 }
 0x178   : > { %v576_v43 = vsel %vm574_vm8, %v573_v29, %v571_v22  ;;  %v575_v61 = vsel %vm574_vm8, %v571_v22, %v573_v29  ;;  %vm487_vm8 = vmand %vm473_vm3, %vm485_vm4  ;;  %vm452_vm4 = vcmp.ge.s32.totalorder %v450_v63, 0 }
 0x179   : > { %v590_v51 = vmul.f32 %v918_v39, %v576_v43  ;;  %v910_v18 = vsel %vm487_vm8, 1.0, %v1089_v0  ;;  %v909_v25 = vsel %vm452_vm4, 1.0, %v1089_v0  ;;  %v701_v43 = vld [vmem:[%s1451_s3 + $0x8] sm:$0xff] }
 0x17b   : > { %v521_v34 = vpop.permute.xlu1 %520  ;;  %v548_v35 = vpop.permute.xlu0 %547 }
 0x17c   : > { %v551_v50 = vsel %vm549_vm11, %v548_v35, %v546_v27  ;;  %v550_v53 = vsel %vm549_vm11, %v546_v27, %v548_v35  ;;  %v616_v35 = vld [vmem:[%s1450_s2] sm:$0xff]  ;;  %vm623_vm11 = vcmask 588800  }
 0x17d   : > { %v569_v59 = vmul.f32 %v917_v49, %v551_v50  ;;  %v568_v62 = vmul.f32 %v916_v52, %v550_v53 }
 0x17f   : > { %v594_v40 = vpop.permute.xlu1 %593  ;;  %v523_v41 = vpop.permute.xlu0 %522 }
 0x180   : > { %v596_v44 = vsel %vm595_vm9, %v592_v23, %v594_v40  ;;  %v597_v45 = vsel %vm595_vm9, %v594_v40, %v592_v23  ;;  %v526_v57 = vsel %vm524_vm14, %v523_v41, %v521_v34  ;;  %v525_v60 = vsel %vm524_vm14, %v521_v34, %v523_v41 }
 0x181   : > { %v615_v46 = vmul.f32 %v920_v37, %v597_v45  ;;  %v614_v48 = vmul.f32 %v914_v38, %v596_v44  ;;  %v544_v1 = vmul.f32 %v915_v56, %v526_v57  ;;  %v543_v10 = vmul.f32 %v914_v38, %v525_v60 }
 0x182   : > { %vm421_vm9 = vcmp.ge.s32.totalorder %v419_v58, 0 }
 0x183   : > { %v496_v54 = vpop.permute.xlu1 %495  ;;  %641 = vmatprep.subr.mxu1 %v615_v46  ;;  %v498_v55 = vpop.permute.xlu0 %497  ;;  %vm431_vm1 = vmand %vm421_vm9, %vm429_vm13 }
 0x184   : > { %642 = vmatpush1.msra.mxu1 %v614_v48  ;;  %v500_v9 = vsel %vm499_vm2, %v496_v54, %v498_v55  ;;  %v501_v13 = vsel %vm499_vm2, %v498_v55, %v496_v54 }
 0x185   : > { %643 = vmatprep.subr.mxu1 %v590_v51  ;;  %v519_v17 = vmul.f32 %v908_v8, %v500_v9  ;;  %v518_v23 = vmul.f32 %v912_v11, %v501_v13 }
 0x186   : > { %644 = vmatpush1.msra.mxu1 %v575_v61 }
 0x187   : > { %v465_v6 = vpop.permute.xlu1 %464  ;;  %645 = vmatprep.subr.mxu1 %v569_v59  ;;  %v467_v7 = vpop.permute.xlu0 %466 }
 0x188   : > { %646 = vmatpush1.msra.mxu1 %v568_v62  ;;  %v469_v16 = vsel %vm468_vm7, %v465_v6, %v467_v7  ;;  %v470_v20 = vsel %vm468_vm7, %v467_v7, %v465_v6 }
 0x189   : > { %647 = vmatprep.subr.mxu1 %v544_v1  ;;  %v494_v24 = vmul.f32 %v911_v15, %v469_v16  ;;  %v493_v27 = vmul.f32 %v910_v18, %v470_v20 }
 0x18a   : > { %648 = vmatpush1.msra.mxu1 %v543_v10 }
 0x18b   : > { %v444_v21 = vpop.permute.xlu1 %443  ;;  %649 = vmatprep.subr.mxu1 %v1273_v14  ;;  %v446_v22 = vpop.permute.xlu0 %445  ;;  %v907_v14 = vsel %vm431_vm1, 1.0, %v1089_v0 }
 0x18c   : > { %650 = vmatpush1.msra.mxu1 %v1269_v12  ;;  %v449_v26 = vsel %vm447_vm6, %v446_v22, %v444_v21  ;;  %v448_v12 = vsel %vm447_vm6, %v444_v21, %v446_v22 }
 0x18d   : > { %651 = vmatprep.subr.mxu1 %v519_v17  ;;  %v462_v30 = vmul.f32 %v909_v25, %v449_v26 }
 0x18e   : > { %652 = vmatpush1.msra.mxu1 %v518_v23 }
 0x18f   : > { %v413_v28 = vpop.permute.xlu1 %412  ;;  %653 = vmatprep.subr.mxu1 %v494_v24  ;;  %v415_v29 = vpop.permute.xlu0 %414 }
 0x190   : > { %v417_v31 = vsel %vm416_vm10, %v413_v28, %v415_v29  ;;  %v418_v32 = vsel %vm416_vm10, %v415_v29, %v413_v28  ;;  %654 = vmatpush1.msra.mxu1 %v493_v27 }
 0x191   : > { %v441_v33 = vmul.f32 %v907_v14, %v418_v32  ;;  %v442_v34 = vmul.f32 %v908_v8, %v417_v31  ;;  %655 = vmatprep.subr.mxu1 %v448_v12 }
 0x192   : > { %656 = vmatpush1.msra.mxu1 %v462_v30 }
 0x193   : > { %657 = vmatprep.subr.mxu1 %v442_v34 }
 0x194   : > { %658 = vmatpush1.msra.mxu1 %v441_v33 }
 0x195   : > { %921 = vmatmul.mubr.msk.f32.vlgmr.msra.gmra.mxu1 %vm623_vm11, %v616_v35 }
 0x19c   : > { %v621_v37 = vpop.permute.xlu1 %620  ;;  %v707_v44 = vpop.permute.xlu0 %706 }
 0x1a0   : > { %v712_v50 = vpop.permute.xlu1 %711 }
 0x255   : > { %v693_v36 = vpop.f32.mrf.mxu1 }
 0x256   : > { %v694_v38 = vadd.f32 %v693_v36, %v621_v37 }
 0x257   : > { %v695_v39 = vpop.f32.mrf.mxu1 }
 0x258   : > { %v696_v40 = vadd.f32 %v695_v39, %v621_v37  ;;  %v698_v19 = vmax.f32 %v694_v38, 0.0 }
 0x25a   : > { %v699_v41 = vmax.f32 %v696_v40, 0.0 }
 0x25c   : > { %751 = vmatprep.subr.mxu0 %v699_v41 }
 0x25d   : > { %752 = vmatpush1.msra.mxu0 %v698_v19 }
 0x25e   : > { %922 = vmatmul.mubr.msk.f32.vlgmr.msra.gmra.mxu0 %vm714_vm12, %v700_v42 }
 0x25f   : > { %791 = vmatprep.mubr.f32.mxu0 %v1089_v0 }
 0x262   : > { %923 = vmatmul.mubr.msk.f32.gmra.mxu0 %vm714_vm12, %v701_v43 }
 0x31e   : > { %v787_v45 = vpop.f32.mrf.mxu0 }
 0x31f   : > { %v788_v46 = vadd.f32 %v787_v45, %v707_v44 }
 0x320   : > { %v789_v47 = vpop.f32.mrf.mxu0 }
 0x321   : > { %v798_v48 = vadd.f32 %v788_v46, %v1257_v5  ;;  %v790_v49 = vadd.f32 %v789_v47, %v707_v44 }
 0x322   : > { %v793_v51 = vpop.f32.mrf.mxu0 }
 0x323   : > { %v802_v52 = vmax.f32 %v798_v48, 0.0  ;;  %v799_v53 = vadd.f32 %v790_v49, %v1254_v4  ;;  %v794_v54 = vadd.f32 %v793_v51, %v712_v50 }
 0x324   : > { %v795_v0 = vpop.f32.mrf.mxu0 }
 0x325   : > { %806 = vst [vmem:[%s296_s20] sm:$0xff] %v802_v52  ;;  %v803_v55 = vmax.f32 %v799_v53, 0.0  ;;  %v800_v56 = vadd.f32 %v794_v54, %v1252_v3  ;;  %v796_v57 = vadd.f32 %v795_v0, %v712_v50 }
 0x327   : > { %807 = vst [vmem:[%s296_s20 + $0x8] sm:$0xff] %v803_v55  ;;  %v804_v5 = vmax.f32 %v800_v56, 0.0  ;;  %v801_v58 = vadd.f32 %v796_v57, %v1250_v2 }
 0x329   : > { %808 = vst [vmem:[%s296_s20 + $0x10] sm:$0xff] %v804_v5  ;;  %v805_v4 = vmax.f32 %v801_v58, 0.0 }
 0x32b   : > { %809 = vst [vmem:[%s296_s20 + $0x18] sm:$0xff] %v805_v4 }
 0x32c   : > { %1033 = shalt.err (!%p1030_p10)
}
 0x32d   : > { %s1034_s15 = scalar_lea.hbm %s1404_s19, 512  ;;  %s1038_s23 = scalar_lea.hbm %s1455_s7, 1024 }
 0x32e   : > { %p1035_p0 = scmp.ne.s32.totalorder %s1404_s19, %s1034_s15  ;;  %p1039_p1 = scmp.lt.s32.totalorder %s1404_s19, %s1455_s7 }
 0x32f   : > { %p1040_p3 = scmp.lt.s32.totalorder %s1038_s23, %s1034_s15 }
 0x330   : > { %p1036_p2 = pnand %p1035_p0, %p1464_p12 }
 0x331   : > { %p1041_p6 = por %p1040_p3, %p1039_p1 }
 0x332   : > { %p1037_p9 = pneg %p1036_p2 }
 0x334   : > { %p1042_p11 = pnand %p1041_p6, %p1037_p9 }
 0x336   : > { %1045 = shalt.err (!%p1042_p11)
}
 0x337   : > { %s1100_s9 = smov 256  }
 0x338   : > { %933 = dma.vmem_to_hbm [thread:$0]  (%p1464_p12), %s1399_s22, 512, %s1404_s19, %s811_s21, %s1100_s9, %s1100_s9, %s1097_s18  }
 0x339 PF: > { %s839_s28 = sand.u32 1, %s1072_s24   ;;  %p1465_p13 = scmp.ne.s32.totalorder %s1461_s14, 0 }
 0x33a   : > { %p1466_p4 = scmp.ge.s32.totalorder %s1084_s27, 2  ;;  %s840_s8 = scalar_lea.sflag [#allocation4], %s839_s28 }
 0x33c   : > { %p940_p5 = pnand %p1466_p4, %p1465_p13 }
 0x33e   : > { %p941_p7 = pneg %p940_p5 }
 0x340   : > { %1067 = dma.done.wait (%p941_p7), %s840_s8, 512  }
 0x341   : > { %1069 = vsyncadd (%p941_p7), %s840_s8, 4294966784  ;;  %p20_p8 = scmp.ge.s32.totalorder %s1166_s30, 4   ;;  %s1467_s24 = smov %s1076_s25 }
 0x342   : > { %s1468_s25 = smov %s1080_s26  ;;  %s1469_s26 = smov %s1178_s10 }
 0x343   : > { %s1470_s27 = smov %s1166_s30  ;;  %22 = sbr.rel (!%p20_p8) target bundleno = 5 (0x5), region = 93 }
 0x348   :  { %845 = vsyncpa [#allocation3], 1 }
 0x349   :  { %847 = vsyncpa [#allocation3 + $0x1], 1 }
 0x34a   :  { %848 = vsyncpa [#allocation4], 1 }
 0x34b   :  { %850 = vsyncpa [#allocation4 + $0x1], 1 }

</bundles_post_ra>
